<compile_context>
chip_gen: v5e
topology: v5e:2x2
jax: 0.10.0
libtpu: 0.0.40
codegen_flags: <defaults>
</compile_context>

<pallas_src>
import jax
import jax.numpy as jnp
from jax import lax
from jax.experimental import pallas as pl
from jax.experimental.pallas import tpu as pltpu

BN_EPS = 1e-5


def ref_finder_kernel(feat_ref, p_ref, ref_out, idx_out):
    # feat_ref: (N, C, L) f32 in VMEM
    # p_ref   : SMEM f32 [wf(0..C-1), qc(C..C+N-1), gamma, beta]
    feat = feat_ref[...]                            # (N, C, L)
    N, C, L = feat.shape
    gamma = p_ref[C + N]
    beta = p_ref[C + N + 1]

    # --- 1x1 conv (no bias), feature part: VPU scalar*vector MAC over C ------
    s = feat[:, 0, :] * p_ref[0]                    # (N, L)
    for c in range(1, C):
        s = s + feat[:, c, :] * p_ref[c]

    # question contribution: per-batch scalar (qst . wq) precomputed in wrapper
    n_iota = lax.broadcasted_iota(jnp.int32, (N, 1), 0)
    qv = jnp.full((N, 1), p_ref[C], dtype=jnp.float32)
    for n in range(1, N):
        qv = jnp.where(n_iota == n, p_ref[C + n], qv)
    s = s + qv                                      # (N, L)

    # --- BatchNorm2d(1) training-mode batch stats (stable two-pass) ----------
    inv_cnt = 1.0 / float(N * L)
    mean = jnp.sum(s) * inv_cnt
    d = s - mean
    var = jnp.sum(d * d) * inv_cnt                  # biased variance
    y = d * (lax.rsqrt(var + BN_EPS) * gamma) + beta
    y = jnp.maximum(y, 0.0)                         # ReLU

    # --- un-normalized softmax over the flattened spatial map ----------------
    m = jnp.max(y, axis=1, keepdims=True)           # (N, 1)
    e = jnp.exp(y - m)                              # (N, L)
    denom = jnp.sum(e, axis=1, keepdims=True)       # (N, 1)

    # --- argmax on the logits (softmax is monotone), first maximal index -----
    iota_l = lax.broadcasted_iota(jnp.int32, y.shape, 1)
    idx = jnp.min(jnp.where(y == m, iota_l, L), axis=1, keepdims=True)  # (N,1)
    idx_out[...] = idx

    # --- ref = (cnn_feat * softmax).sum over spatial: VPU mul + lane reduce,
    #     with 1/denom folded into the tiny (N, C) result. --------------------
    r = jnp.sum(e[:, None, :] * feat, axis=2)       # (N, C)
    ref_out[...] = r * pl.reciprocal(denom, approx=False)


def _ref_finder_impl(cnn_feat, qst, w_conv, bn_gamma, bn_beta):
    """cnn_feat: (N, C, H, W), qst: (N, Q), w_conv: (1, C+Q, 1, 1)."""
    N, C, H, W = cnn_feat.shape
    Q = qst.shape[1]
    L = H * W

    feat = cnn_feat.reshape(N, C, L).astype(jnp.float32)      # (N, C, L)

    wf = w_conv[0, :C, 0, 0].astype(jnp.float32)               # (C,)
    wq = w_conv[0, C:, 0, 0].astype(jnp.float32)               # (Q,)
    qc = jnp.sum(qst.astype(jnp.float32) * wq[None, :], axis=1)  # (N,)
    gb = jnp.stack([jnp.asarray(bn_gamma, jnp.float32),
                    jnp.asarray(bn_beta, jnp.float32)])
    params = jnp.concatenate([wf, qc, gb]).astype(jnp.float32)  # (C + N + 2,)

    flops = int(4 * N * C * L + 12 * N * L)
    bytes_accessed = int(4 * (N * C * L + (C + N + 2) + N * C + N))

    ref_p, idx_p = pl.pallas_call(
        ref_finder_kernel,
        out_shape=(jax.ShapeDtypeStruct((N, C), jnp.float32),
                   jax.ShapeDtypeStruct((N, 1), jnp.int32)),
        grid=(1,),
        in_specs=[pl.BlockSpec((N, C, L), lambda i: (0, 0, 0)),
                  pl.BlockSpec(memory_space=pltpu.MemorySpace.SMEM)],
        out_specs=(pl.BlockSpec((N, C), lambda i: (0, 0)),
                   pl.BlockSpec((N, 1), lambda i: (0, 0))),
        compiler_params=pltpu.CompilerParams(
            dimension_semantics=("arbitrary",)),
        cost_estimate=pl.CostEstimate(
            flops=flops, transcendentals=int(N * L),
            bytes_accessed=bytes_accessed),
    )(feat, params)

    return ref_p, idx_p[:, 0]


ref_finder = jax.jit(_ref_finder_impl)


def ref_finder_reference(cnn_feat, qst, w_conv, bn_gamma, bn_beta):
    """Pure-JAX reference matching the PyTorch forward (for verification)."""
    N, C, H, W = cnn_feat.shape
    Q = qst.shape[1]
    x = jnp.concatenate(
        [cnn_feat, jnp.broadcast_to(qst[:, :, None, None], (N, Q, H, W))],
        axis=1)
    w = w_conv[0, :, 0, 0]
    s = jnp.sum(x * w[None, :, None, None], axis=1)            # (N, H, W)
    mean = s.mean()
    var = ((s - mean) ** 2).mean()
    y = jnp.maximum((s - mean) / jnp.sqrt(var + BN_EPS) * bn_gamma + bn_beta,
                    0.0)
    p = jax.nn.softmax(y.reshape(N, -1), axis=1)
    ref = jnp.einsum('ncl,nl->nc', cnn_feat.reshape(N, C, -1), p,
                     precision=lax.Precision.HIGHEST)
    idx = jnp.argmax(p, axis=1)
    return ref, idx


if __name__ == "__main__":
    # Small shapes consistent with the module: last cnn channel = 4,
    # qst_dim = 8, spatial 16x16, batch 2.
    N, C, H, W, Q = 2, 4, 16, 16, 8

    key = jax.random.PRNGKey(0)
    k_feat, k_qst, k_w = jax.random.split(key, 3)
    cnn_feat = jax.random.normal(k_feat, (N, C, H, W), dtype=jnp.float32)
    qst = jax.random.normal(k_qst, (N, Q), dtype=jnp.float32)

    # Conv2d(C + Q, 1, 1, bias=False) weight, deterministic init.
    w_conv = jax.random.normal(k_w, (1, C + Q, 1, 1), dtype=jnp.float32) * 0.1
    # BatchNorm2d(1) default affine init.
    bn_gamma, bn_beta = 1.0, 0.0

    ref, ref_idx = ref_finder(cnn_feat, qst, w_conv, bn_gamma, bn_beta)
    jax.block_until_ready((ref, ref_idx))

    ref_exp, idx_exp = ref_finder_reference(cnn_feat, qst, w_conv,
                                            bn_gamma, bn_beta)
    assert ref.shape == (N, C) and ref_idx.shape == (N,)
    assert jnp.allclose(ref, ref_exp, atol=1e-4, rtol=1e-4), "ref mismatch"
    assert jnp.all(ref_idx == idx_exp), "ref_idx mismatch"

    print("KERNEL_OK")
</pallas_src>

<mosaic_0001>
module attributes {stable_mosaic.version = 11 : i64} {
  func.func @ref_finder_kernel(%arg0: i32, %arg1: memref<2x4x256xf32, #tpu.memory_space<vmem>>, %arg2: memref<8xf32, #tpu.memory_space<smem>>, %arg3: memref<2x4xf32, #tpu.memory_space<vmem>>, %arg4: memref<2x1xi32, #tpu.memory_space<vmem>>) attributes {dimension_semantics = [#tpu.dimension_semantics<arbitrary>], iteration_bounds = array<i64: 1>, scalar_prefetch = 0 : i64, scratch_operands = 0 : i64, tpu.core_type = #tpu.core_type<tc>, window_params = [{pipeline_mode = #tpu.pipeline_mode<synchronous>, transform_indices = @transform_0, window_bounds = array<i64: 2, 4, 256>}, {transform_indices = @transform_1, window_bounds = array<i64: 8>}, {pipeline_mode = #tpu.pipeline_mode<synchronous>, transform_indices = @transform_2, window_bounds = array<i64: 2, 4>}, {pipeline_mode = #tpu.pipeline_mode<synchronous>, transform_indices = @transform_3, window_bounds = array<i64: 2, 1>}]} {
    %c0 = arith.constant 0 : index
    %c0_0 = arith.constant 0 : index
    %c0_1 = arith.constant 0 : index
    %0 = vector.load %arg1[%c0, %c0_0, %c0_1] : memref<2x4x256xf32, #tpu.memory_space<vmem>>, vector<2x4x256xf32>
    %c6 = arith.constant 6 : index
    %1 = memref.load %arg2[%c6] : memref<8xf32, #tpu.memory_space<smem>>
    %c7 = arith.constant 7 : index
    %2 = memref.load %arg2[%c7] : memref<8xf32, #tpu.memory_space<smem>>
    %3 = vector.extract_strided_slice %0 {offsets = [0, 0, 0], sizes = [2, 1, 256], strides = [1, 1, 1]} : vector<2x4x256xf32> to vector<2x1x256xf32>
    %4 = vector.shape_cast %3 : vector<2x1x256xf32> to vector<2x256xf32>
    %c0_2 = arith.constant 0 : index
    %5 = memref.load %arg2[%c0_2] : memref<8xf32, #tpu.memory_space<smem>>
    %6 = vector.broadcast %5 : f32 to vector<2x256xf32>
    %7 = arith.mulf %4, %6 : vector<2x256xf32>
    %8 = vector.extract_strided_slice %0 {offsets = [0, 1, 0], sizes = [2, 1, 256], strides = [1, 1, 1]} : vector<2x4x256xf32> to vector<2x1x256xf32>
    %9 = vector.shape_cast %8 : vector<2x1x256xf32> to vector<2x256xf32>
    %c1 = arith.constant 1 : index
    %10 = memref.load %arg2[%c1] : memref<8xf32, #tpu.memory_space<smem>>
    %11 = vector.broadcast %10 : f32 to vector<2x256xf32>
    %12 = arith.mulf %9, %11 : vector<2x256xf32>
    %13 = arith.addf %7, %12 : vector<2x256xf32>
    %14 = vector.extract_strided_slice %0 {offsets = [0, 2, 0], sizes = [2, 1, 256], strides = [1, 1, 1]} : vector<2x4x256xf32> to vector<2x1x256xf32>
    %15 = vector.shape_cast %14 : vector<2x1x256xf32> to vector<2x256xf32>
    %c2 = arith.constant 2 : index
    %16 = memref.load %arg2[%c2] : memref<8xf32, #tpu.memory_space<smem>>
    %17 = vector.broadcast %16 : f32 to vector<2x256xf32>
    %18 = arith.mulf %15, %17 : vector<2x256xf32>
    %19 = arith.addf %13, %18 : vector<2x256xf32>
    %20 = vector.extract_strided_slice %0 {offsets = [0, 3, 0], sizes = [2, 1, 256], strides = [1, 1, 1]} : vector<2x4x256xf32> to vector<2x1x256xf32>
    %21 = vector.shape_cast %20 : vector<2x1x256xf32> to vector<2x256xf32>
    %c3 = arith.constant 3 : index
    %22 = memref.load %arg2[%c3] : memref<8xf32, #tpu.memory_space<smem>>
    %23 = vector.broadcast %22 : f32 to vector<2x256xf32>
    %24 = arith.mulf %21, %23 : vector<2x256xf32>
    %25 = arith.addf %19, %24 : vector<2x256xf32>
    %26 = tpu.iota {dimensions = array<i32: 0>} : vector<2x1xi32>
    %c4 = arith.constant 4 : index
    %27 = memref.load %arg2[%c4] : memref<8xf32, #tpu.memory_space<smem>>
    %28 = vector.broadcast %27 : f32 to vector<2x1xf32>
    %c1_i32 = arith.constant 1 : i32
    %29 = vector.broadcast %c1_i32 : i32 to vector<2x1xi32>
    %30 = arith.cmpi eq, %26, %29 : vector<2x1xi32>
    %c5 = arith.constant 5 : index
    %31 = memref.load %arg2[%c5] : memref<8xf32, #tpu.memory_space<smem>>
    %32 = vector.broadcast %31 : f32 to vector<2x1xf32>
    %33 = arith.select %30, %32, %28 : vector<2x1xi1>, vector<2x1xf32>
    %34 = vector.broadcast %33 : vector<2x1xf32> to vector<2x256xf32>
    %35 = arith.addf %25, %34 : vector<2x256xf32>
    %36 = vector.shape_cast %35 : vector<2x256xf32> to vector<1x2x256xf32>
    %cst = arith.constant dense<0.000000e+00> : vector<1xf32>
    %37 = vector.multi_reduction <add>, %36, %cst [1, 2] : vector<1x2x256xf32> to vector<1xf32>
    %38 = vector.shape_cast %37 : vector<1xf32> to vector<1x1x1xf32>
    %39 = vector.extract %38[0, 0, 0] : f32 from vector<1x1x1xf32>
    %cst_3 = arith.constant 0.001953125 : f32
    %40 = arith.mulf %39, %cst_3 : f32
    %41 = vector.broadcast %40 : f32 to vector<2x256xf32>
    %42 = arith.subf %35, %41 : vector<2x256xf32>
    %43 = arith.mulf %42, %42 : vector<2x256xf32>
    %44 = vector.shape_cast %43 : vector<2x256xf32> to vector<1x2x256xf32>
    %cst_4 = arith.constant dense<0.000000e+00> : vector<1xf32>
    %45 = vector.multi_reduction <add>, %44, %cst_4 [1, 2] : vector<1x2x256xf32> to vector<1xf32>
    %46 = vector.shape_cast %45 : vector<1xf32> to vector<1x1x1xf32>
    %47 = vector.extract %46[0, 0, 0] : f32 from vector<1x1x1xf32>
    %cst_5 = arith.constant 0.001953125 : f32
    %48 = arith.mulf %47, %cst_5 : f32
    %cst_6 = arith.constant 9.99999974E-6 : f32
    %49 = arith.addf %48, %cst_6 : f32
    %50 = math.rsqrt %49 : f32
    %51 = arith.mulf %50, %1 : f32
    %52 = vector.broadcast %51 : f32 to vector<2x256xf32>
    %53 = arith.mulf %42, %52 : vector<2x256xf32>
    %54 = vector.broadcast %2 : f32 to vector<2x256xf32>
    %55 = arith.addf %53, %54 : vector<2x256xf32>
    %cst_7 = arith.constant 0.000000e+00 : f32
    %56 = vector.broadcast %cst_7 : f32 to vector<2x256xf32>
    %57 = arith.maximumf %55, %56 : vector<2x256xf32>
    %cst_8 = arith.constant dense<0xFF800000> : vector<2xf32>
    %58 = vector.multi_reduction <maximumf>, %57, %cst_8 [1] : vector<2x256xf32> to vector<2xf32>
    %59 = vector.shape_cast %58 : vector<2xf32> to vector<2x1xf32>
    %60 = vector.broadcast %59 : vector<2x1xf32> to vector<2x256xf32>
    %61 = arith.subf %57, %60 : vector<2x256xf32>
    %62 = math.exp %61 : vector<2x256xf32>
    %cst_9 = arith.constant dense<0.000000e+00> : vector<2xf32>
    %63 = vector.multi_reduction <add>, %62, %cst_9 [1] : vector<2x256xf32> to vector<2xf32>
    %64 = vector.shape_cast %63 : vector<2xf32> to vector<2x1xf32>
    %65 = tpu.iota {dimensions = array<i32: 1>} : vector<2x256xi32>
    %66 = vector.broadcast %59 : vector<2x1xf32> to vector<2x256xf32>
    %67 = arith.cmpf oeq, %57, %66 : vector<2x256xf32>
    %c256_i32 = arith.constant 256 : i32
    %68 = vector.broadcast %c256_i32 : i32 to vector<2x256xi32>
    %69 = arith.select %67, %65, %68 : vector<2x256xi1>, vector<2x256xi32>
    %cst_10 = arith.constant dense<2147483647> : vector<2xi32>
    %70 = vector.multi_reduction <minsi>, %69, %cst_10 [1] : vector<2x256xi32> to vector<2xi32>
    %71 = vector.shape_cast %70 : vector<2xi32> to vector<2x1xi32>
    %c0_11 = arith.constant 0 : index
    %c0_12 = arith.constant 0 : index
    %72 = vector.load %arg4[%c0_11, %c0_12] : memref<2x1xi32, #tpu.memory_space<vmem>>, vector<2x1xi32>
    tpu.vector_store %arg4[%c0_11, %c0_12], %71 {strides = array<i32>} : memref<2x1xi32, #tpu.memory_space<vmem>>, vector<2x1xi32>,
    %73 = vector.shape_cast %62 : vector<2x256xf32> to vector<2x1x256xf32>
    %74 = vector.broadcast %73 : vector<2x1x256xf32> to vector<2x4x256xf32>
    %75 = arith.mulf %74, %0 : vector<2x4x256xf32>
    %cst_13 = arith.constant dense<0.000000e+00> : vector<2x4xf32>
    %76 = vector.multi_reduction <add>, %75, %cst_13 [2] : vector<2x4x256xf32> to vector<2x4xf32>
    %77 = tpu.reciprocal %64 : vector<2x1xf32> -> vector<2x1xf32>
    %78 = vector.broadcast %77 : vector<2x1xf32> to vector<2x4xf32>
    %79 = arith.mulf %76, %78 : vector<2x4xf32>
    %c0_14 = arith.constant 0 : index
    %c0_15 = arith.constant 0 : index
    %80 = vector.load %arg3[%c0_14, %c0_15] : memref<2x4xf32, #tpu.memory_space<vmem>>, vector<2x4xf32>
    tpu.vector_store %arg3[%c0_14, %c0_15], %79 {strides = array<i32>} : memref<2x4xf32, #tpu.memory_space<vmem>>, vector<2x4xf32>,
    return
  }
  func.func @transform_0(%arg0: i32) -> (i32, i32, i32) {
    %c0_i32 = arith.constant 0 : i32
    %c0_i32_0 = arith.constant 0 : i32
    %c0_i32_1 = arith.constant 0 : i32
    %c0_i32_2 = arith.constant 0 : i32
    return %c0_i32, %c0_i32_0, %c0_i32_1 : i32, i32, i32
  }
  func.func @transform_1(%arg0: i32) -> i32 {
    %c0_i32 = arith.constant 0 : i32
    %c0_i32_0 = arith.constant 0 : i32
    return %c0_i32 : i32
  }
  func.func @transform_2(%arg0: i32) -> (i32, i32) {
    %c0_i32 = arith.constant 0 : i32
    %c0_i32_0 = arith.constant 0 : i32
    %c0_i32_1 = arith.constant 0 : i32
    return %c0_i32, %c0_i32_0 : i32, i32
  }
  func.func @transform_3(%arg0: i32) -> (i32, i32) {
    %c0_i32 = arith.constant 0 : i32
    %c0_i32_0 = arith.constant 0 : i32
    %c0_i32_1 = arith.constant 0 : i32
    return %c0_i32, %c0_i32_0 : i32, i32
  }
}

</mosaic_0001>

<bundles_post_ra>
// kernel: _ref_finder_impl.1
= control target key start
LH: loop header
LB: loop body
LE: loop exit
PB: predicated region body
PF: predicated region fallthrough
CT: control target
= control target key end

     0   :  { %9 = vsyncpa [#allocation4], 0  ;;  %s495_s0 = inlined_call_operand.vmem [shape: f32[2,4,256], index: 0, kind: input, shape index: {}]   ;;  %s496_s1 = inlined_call_operand.vmem [shape: f32[8], index: 1, kind: input, shape index: {}]   ;;  %s497_s2 = inlined_call_operand.hbm [shape: f32[2,4], index: 2, kind: output, shape index: {0}]   ;;  %s498_s3 = inlined_call_operand.vmem [shape: s32[2,1], index: 3, kind: output, shape index: {1}]  }
   0x1   :  { %10 = vsyncpa [#allocation3], 0  ;;  %s18_s14 = sshll.u32 %s496_s1, 4  ;;  %s415_s15 = smov [#allocation2]   ;;  %s19_s14 = int_to_ptr.vmem [resolvable:$true] %s18_s14 }
   0x2   :  { %21 = dma.vmem_to_smem %s19_s14, 16, %s415_s15, [#allocation4]  }
   0x3   :  { %411 = dma.done.wait [#allocation4], 16  }
   0x4   :  { %412 = vsyncadd [#allocation4], 4294967280 }
   0x5   :  { %26 = sfence }
   0x6   :  { %v27_v0 = vld [vmem:[%s495_s0] sm:$0xff]  ;;  %s31_s18 = sld [smem:[#allocation2]]  ;;  %v28_v1 = vld [vmem:[%s495_s0 + $0x8] sm:$0xff]  ;;  %v77_v2 = vlaneseq  ;;  %v416_v3 = vmov 839922192   ;;  %vm101_vm1 = vcmask 1041409  }
   0x7   :  { %s344_s21 = sld [smem:[#allocation2 + $0x1]]  ;;  %261 = vst [vmem:[#allocation1] ss:$2 sm:$0xff] %v27_v0  ;;  %v448_v4 = vunpack.c.l.s4 %v416_v3  ;;  %vm106_vm2 = vcmask 1041408   ;;  %vm220_vm6 = vcmask 1043456   ;;  %vm249_vm15 = vcmask 1024  }
   0x8   :  { %s347_s22 = sld [smem:[#allocation2 + $0x2]]  ;;  %265 = vst [vmem:[#allocation1 + $0x10] ss:$2 sm:$0xff] %v28_v1  ;;  %v78_v5 = vshrl.u32 %v77_v2, 7  ;;  %s418_s8 = smov [#allocation5]  }
   0x9   :  { %s350_s1 = sld [smem:[#allocation2 + $0x3]]  ;;  %v88_v9 = vunpack.c.0.s8 %v448_v4  ;;  %s326_s9 = sshll.u32 %s418_s8, 4  ;;  %s327_s9 = int_to_ptr.vmem [resolvable:$true] %s326_s9 }
   0xa   :  { %s353_s23 = sld [smem:[#allocation2 + $0x4]]  ;;  %vm81_vm0 = vcmp.eq.s32.totalorder %v78_v5, 1  ;;  %s328_s12 = sshll.u32 %s497_s2, 4  ;;  %s329_s12 = int_to_ptr.hbm [resolvable:$true] %s328_s12 }
   0xb   :  { %s354_s24 = sld [smem:[#allocation2 + $0x5]] }
   0xc   :  { %v32_v6 = vstv %s31_s18  ;;  %s342_s29 = sld [smem:[#allocation2 + $0x6]] }
   0xd   :  { %v33_v7 = vmul.f32 %v32_v6, %v27_v0  ;;  %v36_v8 = vstv %s344_s21  ;;  %v34_v10 = vmul.f32 %v32_v6, %v28_v1  ;;  %s343_s30 = sld [smem:[#allocation2 + $0x7]] }
   0xe   :  { %v37_v11 = vmul.f32 %v36_v8, %v27_v0  ;;  %v38_v12 = vmul.f32 %v36_v8, %v28_v1  ;;  %v50_v13 = vstv %s347_s22 }
   0xf   :  { %v51_v14 = vmul.f32 %v50_v13, %v27_v0  ;;  %v52_v15 = vmul.f32 %v50_v13, %v28_v1  ;;  %v64_v16 = vstv %s350_s1 }
  0x10   :  { %v345_v17 = vrot.slane %v37_v11, 9  ;;  %v346_v18 = vrot.slane %v38_v12, 9  ;;  %v65_v19 = vmul.f32 %v64_v16, %v27_v0  ;;  %v66_v20 = vmul.f32 %v64_v16, %v28_v1 }
  0x11   :  { %v348_v21 = vrot.slane %v51_v14, 10  ;;  %v349_v22 = vrot.slane %v52_v15, 10  ;;  %v80_v23 = vstv %s353_s23  ;;  %v83_v24 = vstv %s354_s24 }
  0x12   :  { %v47_v25 = vadd.f32 %v345_v17, %v33_v7  ;;  %v48_v26 = vadd.f32 %v346_v18, %v34_v10  ;;  %v351_v27 = vrot.slane %v65_v19, 11  ;;  %v352_v28 = vrot.slane %v66_v20, 11 }
  0x13   :  { %v84_v29 = vsel %vm81_vm0, %v83_v24, %v80_v23  ;;  %v165_v23 = vstv %s343_s30  ;;  %vm319_vm0 = vcmask 25600  }
  0x14   :  { %v61_v30 = vadd.f32 %v348_v21, %v47_v25  ;;  %v62_v31 = vadd.f32 %v349_v22, %v48_v26  ;;  %v89_v32 = vperm.slane %v84_v29, %v88_v9 }
  0x16   :  { %v75_v33 = vadd.f32 %v351_v27, %v61_v30  ;;  %v76_v34 = vadd.f32 %v352_v28, %v62_v31  ;;  %v90_v35 = vrot.slane %v89_v32, 1 }
  0x18   :  { %v93_v36 = vadd.f32 %v89_v32, %v75_v33  ;;  %v94_v37 = vadd.f32 %v90_v35, %v76_v34 }
  0x1a   :  { %v97_v38 = vperm.slane %v93_v36, 0  ;;  %v98_v39 = vperm.slane %v93_v36, 4  ;;  %v99_v40 = vperm.slane %v94_v37, 0  ;;  %v100_v41 = vperm.slane %v94_v37, 4 }
  0x1c   :  { %v102_v42 = vsel %vm101_vm1, %v99_v40, %v97_v38  ;;  %v103_v43 = vsel %vm101_vm1, %v100_v41, %v98_v39  ;;  %v467_v39 = vand.u32 127, %v77_v2 }
  0x1d   :  { %v107_v44 = vsel %vm106_vm2, %v102_v42, 0.0  ;;  %v108_v45 = vsel %vm106_vm2, %v103_v43, 0.0 }
  0x1e   :  { %v109_v46 = vadd.f32 %v108_v45, %v107_v44  ;;  %v216_v40 = vadd.s32 128, %v467_v39 }
  0x20   :  { %110 = vadd.xlane.f32.xlu0 %v109_v46  ;;  %v219_v41 = vrot.slane %v216_v40, 4 }
  0x22   :  { %v221_v42 = vsel %vm220_vm6, %v467_v39, %v219_v41 }
  0x23   :  { %v222_v45 = vrot.slane %v221_v42, 1 }
  0x93   :  { %v111_v47 = vpop.xlane.xlu0 %110 }
  0x94   :  { %v112_v48 = vrot.slane %v111_v47, 4 }
  0x96   :  { %v113_v49 = vadd.f32 %v112_v48, %v111_v47 }
  0x98   :  { %v114_v50 = vrot.slane %v113_v49, 2 }
  0x9a   :  { %v115_v51 = vadd.f32 %v114_v50, %v113_v49 }
  0x9c   :  { %v116_v52 = vrot.slane %v115_v51, 1 }
  0x9e   :  { %v117_v53 = vadd.f32 %v116_v52, %v115_v51 }
  0xa0   :  { %355 = vpush %v117_v53 }
  0xd1   :  { %s356_s0 = spop %355 }
  0xd2   :  { %s119_s25 = smul.f32 0.001953125, %s356_s0 }
  0xd4   :  { %v120_v54 = vstv %s119_s25 }
  0xd5   :  { %v121_v55 = vsub.f32 %v93_v36, %v120_v54  ;;  %v122_v56 = vsub.f32 %v94_v37, %v120_v54 }
  0xd7   :  { %v123_v57 = vmul.f32 %v121_v55, %v121_v55  ;;  %v124_v58 = vmul.f32 %v122_v56, %v122_v56 }
  0xd9   :  { %v127_v59 = vperm.slane %v123_v57, 0  ;;  %v128_v60 = vperm.slane %v123_v57, 4  ;;  %v129_v61 = vperm.slane %v124_v58, 0  ;;  %v130_v62 = vperm.slane %v124_v58, 4 }
  0xdb   :  { %v131_v63 = vsel %vm101_vm1, %v129_v61, %v127_v59  ;;  %v132_v0 = vsel %vm101_vm1, %v130_v62, %v128_v60 }
  0xdc   :  { %v135_v1 = vsel %vm106_vm2, %v131_v63, 0.0  ;;  %v136_v3 = vsel %vm106_vm2, %v132_v0, 0.0 }
  0xdd   :  { %v137_v5 = vadd.f32 %v136_v3, %v135_v1  ;;  %v262_v1 = vld.sshfl [vmem:[#allocation1] sm:$0xff pattern:$0x75316420]  ;;  %v263_v3 = vld.sshfl [vmem:[#allocation1 + $0x8] sm:$0xff pattern:$0x75316420] }
  0xdf   :  { %138 = vadd.xlane.f32.xlu0 %v137_v5 }
 0x152   :  { %v139_v6 = vpop.xlane.xlu0 %138 }
 0x153   :  { %v140_v7 = vrot.slane %v139_v6, 4 }
 0x155   :  { %v141_v8 = vadd.f32 %v140_v7, %v139_v6 }
 0x157   :  { %v142_v10 = vrot.slane %v141_v8, 2 }
 0x159   :  { %v143_v11 = vadd.f32 %v142_v10, %v141_v8 }
 0x15b   :  { %v144_v12 = vrot.slane %v143_v11, 1 }
 0x15d   :  { %v145_v13 = vadd.f32 %v144_v12, %v143_v11 }
 0x15f   :  { %357 = vpush %v145_v13 }
 0x190   :  { %s358_s26 = spop %357 }
 0x191   :  { %s147_s27 = smul.f32 0.001953125, %s358_s26 }
 0x193   :  { %s148_s28 = sadd.f32 1e-05, %s147_s27 }
 0x195   :  { %v149_v14 = vstv %s148_s28 }
 0x196   :  { %367 = vrsqrt.f32 %v149_v14  ;;  %vm156_vm4 = vweird.f32 %v149_v14 }
 0x19c   :  { %v368_v15 = vpop.eup %367 }
 0x19d   :  { %v151_v16 = vmul.f32 %v368_v15, %v149_v14  ;;  %vm157_vm3 = vweird.f32 %v368_v15  ;;  %v266_v14 = vld.sshfl [vmem:[#allocation1 + $0x10] sm:$0xff pattern:$0x75316420] }
 0x19e   :  { %vm158_vm5 = vmor %vm156_vm4, %vm157_vm3 }
 0x19f   :  { %v152_v17 = vmul.f32 %v368_v15, %v151_v16 }
 0x1a1   :  { %v153_v18 = vmul.f32 0.5, %v152_v17 }
 0x1a3   :  { %v154_v19 = vsub.f32 1.5, %v153_v18 }
 0x1a5   :  { %v155_v20 = vmul.f32 %v368_v15, %v154_v19 }
 0x1a7   :  { %v159_v21 = vsel %vm158_vm5, %v368_v15, %v155_v20  ;;  %v267_v15 = vld.sshfl [vmem:[#allocation1 + $0x18] sm:$0xff pattern:$0x75316420] }
 0x1a8   :  { %359 = vpush %v159_v21 }
 0x1d9   :  { %s360_s4 = spop %359 }
 0x1da   :  { %s161_s5 = smul.f32 %s360_s4, %s342_s29 }
 0x1dc   :  { %v162_v22 = vstv %s161_s5 }
 0x1dd   :  { %v163_v24 = vmul.f32 %v162_v22, %v121_v55  ;;  %v164_v25 = vmul.f32 %v162_v22, %v122_v56 }
 0x1df   :  { %v166_v26 = vadd.f32 %v165_v23, %v163_v24  ;;  %v167_v27 = vadd.f32 %v165_v23, %v164_v25 }
 0x1e1   :  { %v168_v28 = vmax.f32 %v166_v26, 0.0  ;;  %v169_v29 = vmax.f32 %v167_v27, 0.0 }
 0x1e3   :  { %v172_v30 = vperm.slane %v168_v28, 0  ;;  %v173_v31 = vperm.slane %v168_v28, 4  ;;  %v174_v32 = vperm.slane %v169_v29, 0  ;;  %v175_v33 = vperm.slane %v169_v29, 4 }
 0x1e5   :  { %v176_v34 = vsel %vm101_vm1, %v174_v32, %v172_v30  ;;  %v177_v35 = vsel %vm101_vm1, %v175_v33, %v173_v31 }
 0x1e6   :  { %v180_v36 = vsel %vm106_vm2, %v176_v34, -inf  ;;  %v181_v37 = vsel %vm106_vm2, %v177_v35, -inf }
 0x1e7   :  { %v182_v38 = vmax.f32 %v180_v36, %v181_v37 }
 0x1e9   :  { %183 = vmax.xlane.f32.xlu1 %v182_v38 }
 0x25c   :  { %v184_v43 = vpop.xlane.xlu1 %183 }
 0x25d   :  { %v189_v44 = vperm.slane %v184_v43, %v88_v9 }
 0x25f   :  { %v190_v46 = vrot.slane %v189_v44, 1  ;;  %v193_v47 = vsub.f32 %v168_v28, %v189_v44  ;;  %vm217_vm7 = vcmp.eq.f32.partialorder %v168_v28, %v189_v44 }
 0x260   :  { %v223_v48 = vsel %vm217_vm7, %v221_v42, 256 }
 0x261   :  { %v194_v49 = vsub.f32 %v169_v29, %v190_v46  ;;  %v195_v50 = vmul.f32 1.442695, %v193_v47  ;;  %vm218_vm8 = vcmp.eq.f32.partialorder %v169_v29, %v190_v46  ;;  %v225_v51 = vperm.slane %v223_v48, 0 }
 0x262   :  { %v224_v2 = vsel %vm218_vm8, %v222_v45, 256  ;;  %v226_v52 = vperm.slane %v223_v48, 4  ;;  %v417_v29 = vmov 0  }
 0x263   :  { %369 = vpow2.f32 %v195_v50  ;;  %v197_v53 = vmul.f32 1.442695, %v194_v49  ;;  %v227_v54 = vperm.slane %v224_v2, 0  ;;  %v228_v55 = vperm.slane %v224_v2, 4  ;;  %366 = vset.pattern.permute.xlu0 %v417_v29  ;;  %365 = vset.pattern.permute.xlu2 %v417_v29 }
 0x265   :  { %371 = vpow2.f32 %v197_v53  ;;  %v229_v56 = vsel %vm101_vm1, %v227_v54, %v225_v51  ;;  %v230_v4 = vsel %vm101_vm1, %v228_v55, %v226_v52 }
 0x266   :  { %v231_v9 = vsel %vm106_vm2, %v229_v56, 2147483647  ;;  %v232_v57 = vsel %vm106_vm2, %v230_v4, 2147483647 }
 0x267   :  { %vm233_vm9 = vcmp.lt.s32.totalorder %v231_v9, %v232_v57 }
 0x268   :  { %v234_v58 = vsel %vm233_vm9, %v231_v9, %v232_v57 }
 0x269   :  { %v370_v59 = vpop.eup %369  ;;  %v236_v60 = vshra.s32 %v234_v58, 16  ;;  %v235_v30 = vand.u32 65535, %v234_v58 }
 0x26a   :  { %v201_v61 = vperm.slane %v370_v59, 0  ;;  %v202_v62 = vperm.slane %v370_v59, 4 }
 0x26b   :  { %v372_v63 = vpop.eup %371  ;;  %v238_v0 = vcvt.s32.f32 %v236_v60  ;;  %v237_v32 = vcvt.s32.f32 %v235_v30 }
 0x26c   :  { %v203_v5 = vperm.slane %v372_v63, 0  ;;  %v204_v6 = vperm.slane %v372_v63, 4  ;;  %v255_v7 = vperm.slane %v201_v61, 0  ;;  %v256_v8 = vperm.slane %v202_v62, 0 }
 0x26d   :  { %239 = vmin.xlane.f32.xlu2 %v238_v0 }
 0x26e   :  { %v205_v10 = vsel %vm101_vm1, %v203_v5, %v201_v61  ;;  %v206_v11 = vsel %vm101_vm1, %v204_v6, %v202_v62  ;;  %v272_v12 = vmul.f32 %v262_v1, %v255_v7  ;;  %v273_v13 = vmul.f32 %v263_v3, %v256_v8 }
 0x26f   :  { %v209_v16 = vsel %vm106_vm2, %v205_v10, 0.0  ;;  %v210_v17 = vsel %vm106_vm2, %v206_v11, 0.0  ;;  %v257_v18 = vperm.slane %v203_v5, 0  ;;  %v258_v19 = vperm.slane %v204_v6, 0 }
 0x270   :  { %v211_v20 = vadd.f32 %v210_v17, %v209_v16  ;;  %v276_v21 = vsel %vm220_vm6, %v272_v12, 0.0  ;;  %v277_v22 = vsel %vm220_vm6, %v273_v13, 0.0 }
 0x271   :  { %v274_v23 = vmul.f32 %v266_v14, %v257_v18  ;;  %v275_v24 = vmul.f32 %v267_v15, %v258_v19  ;;  %v278_v25 = vadd.f32 %v277_v22, %v276_v21 }
 0x272   :  { %212 = vadd.xlane.f32.xlu1 %v211_v20 }
 0x273   :  { %v281_v26 = vsel %vm220_vm6, %v274_v23, 0.0  ;;  %v282_v27 = vsel %vm220_vm6, %v275_v24, 0.0 }
 0x274   :  { %v283_v28 = vadd.f32 %v282_v27, %v281_v26 }
 0x275   :  { %279 = vadd.xlane.f32.xlu2 %v278_v25 }
 0x276   :  { %284 = vadd.xlane.f32.xlu0 %v283_v28 }
 0x2e0   :  { %v240_v31 = vpop.xlane.xlu2 %239 }
 0x2e1   :  { %vm241_vm10 = vcmp.eq.f32.partialorder %v238_v0, %v240_v31  ;;  %v246_v51 = vcvt.f32.s32 %v240_v31 }
 0x2e2   :  { %v242_v33 = vsel %vm241_vm10, %v237_v32, inf }
 0x2e3   :  { %243 = vmin.xlane.f32.xlu1 %v242_v33  ;;  %v247_v53 = vshll.u32 %v246_v51, 16 }
 0x2e5   :  { %v213_v34 = vpop.xlane.xlu1 %212 }
 0x2e6   :  { %373 = vrcp.f32 %v213_v34  ;;  %v297_v38 = vand.u32 2147483648, %v213_v34  ;;  %v295_v41 = vand.u32 2147483647, %v213_v34  ;;  %vm291_vm12 = vweird.f32 %v213_v34 }
 0x2e8   :  { %v298_v43 = vor.u32 1.1754944e-38, %v297_v38  ;;  %vm296_vm14 = vcmp.eq.f32.partialorder %v295_v41, 8.507059e+37  ;;  %v280_v48 = vpop.xlane.xlu2 %279 }
 0x2e9   :  { %v285_v49 = vpop.xlane.xlu0 %284 }
 0x2ec   :  { %v374_v35 = vpop.eup %373 }
 0x2ed   :  { %v287_v36 = vmul.f32 %v374_v35, %v213_v34  ;;  %vm292_vm11 = vweird.f32 %v374_v35 }
 0x2ee   :  { %vm293_vm13 = vmor %vm291_vm12, %vm292_vm11 }
 0x2ef   :  { %v288_v37 = vsub.f32 1.0, %v287_v36 }
 0x2f1   :  { %v289_v40 = vmul.f32 %v374_v35, %v288_v37 }
 0x2f3   :  { %v290_v42 = vadd.f32 %v374_v35, %v289_v40 }
 0x2f5   :  { %v294_v44 = vsel %vm293_vm13, %v374_v35, %v290_v42 }
 0x2f6   :  { %v299_v45 = vsel %vm296_vm14, %v298_v43, %v294_v44 }
 0x2f7   :  { %v301_v46 = vperm.slane %v299_v45, 0  ;;  %v302_v47 = vperm.slane %v299_v45, 1 }
 0x2f9   :  { %v305_v50 = vmul.f32 %v301_v46, %v280_v48  ;;  %v306_v2 = vmul.f32 %v302_v47, %v285_v49 }
 0x2fb   :  { %313 = vperm.xlu0 %366, %v306_v2   ;;  %310 = vperm.xlu2 %365, %v305_v50  }
 0x355   :  { %v311_v56 = vpop.permute.xlu2 %310 }
 0x356   :  { %v244_v52 = vpop.xlane.xlu1 %243  ;;  %v315_v9 = vperm.slane %v311_v56, %v467_v39 }
 0x357   :  { %v245_v54 = vcvt.f32.s32 %v244_v52 }
 0x359   :  { %v248_v55 = vadd.s32 %v247_v53, %v245_v54 }
 0x35b   :  { %250 = vst.msk [vmem:[%s498_s3] sm:$0x3] %vm249_vm15, %v248_v55 }
 0x36d   :  { %v314_v4 = vpop.permute.xlu0 %313 }
 0x36e   :  { %v316_v57 = vperm.slane %v314_v4, %v467_v39 }
 0x370   :  { %v317_v58 = vsel %vm101_vm1, %v316_v57, %v315_v9 }
 0x371   :  { %320 = vst.msk [vmem:[#allocation5] sm:$0x3] %vm319_vm0, %v317_v58 }
 0x372   :  { %331 = dma.vmem_to_hbm [thread:$0]  %s327_s9, 32, %s329_s12, [#allocation3]  }
 0x373   :  { %413 = dma.done.wait [#allocation3], 32  }
 0x374   :  { %414 = vsyncadd [#allocation3], 4294967264 }
 0x375   :  { %340 = vsyncpa [#allocation3], 1 }
 0x376   :  { %341 = vsyncpa [#allocation4], 1 }

</bundles_post_ra>
